<compile_context>
chip_gen: v7x
topology: tpu7x:2x2x1
jax: 0.10.0
libtpu: 0.0.40
codegen_flags: <defaults>
</compile_context>

<pallas_src>
import jax
import jax.numpy as jnp
from jax.experimental import pallas as pl
from jax.experimental.pallas import tpu as pltpu


def _round_up(x, m):
    return ((x + m - 1) // m) * m


def edge_mlp_kernel(x_ref, w1_ref, b1_ref, w2_ref, b2_ref, out_ref):
    # x_ref : (Fin, TE)  feature-major tile of cat([src, dest, edge], dim=1)
    # w1_ref: (H, Fin)   first Linear, pre-transposed
    # b1_ref: (H, 1)     broadcast along the dense lane axis
    # w2_ref: (Fo, H)    second Linear, pre-transposed
    # b2_ref: (Fo, 1)
    # out   : (Fo, TE)
    h = jnp.dot(w1_ref[...], x_ref[...],
                preferred_element_type=jnp.float32)
    h += b1_ref[...]
    h = jnp.maximum(h, 0.0)                       # ReLU
    y = jnp.dot(w2_ref[...], h.astype(w2_ref.dtype),
                preferred_element_type=jnp.float32)
    y += b2_ref[...]
    out_ref[...] = y.astype(out_ref.dtype)


def edge_model_forward(src, dest, edge_attr, params, *, tile_e=4096):
    """Pallas implementation of EdgeModel.forward.  Returns (E, Fe)."""
    E, Fn = src.shape
    Fe = edge_attr.shape[1]
    Fin = 2 * Fn + Fe
    H = params["w1"].shape[1]
    Fo = params["w2"].shape[1]          # == num_edge_features

    # Lane tile: multiple of 128, capped at the (padded) E.
    te = min(_round_up(tile_e, 128), _round_up(E, 128))
    E_pad = _round_up(E, te)

    # torch.cat([src, dest, edge], 1) in feature-major layout, padded on the
    # lane axis.  One XLA fusion: transpose + concat + pad.
    x_t = jnp.concatenate([src.T, dest.T, edge_attr.T], axis=0)   # (Fin, E)
    if E_pad != E:
        x_t = jnp.pad(x_t, ((0, 0), (0, E_pad - E)))              # (Fin, E_pad)

    # Pre-transpose parameters once in the wrapper (stored (in, out) here).
    w1_t = params["w1"].T                       # (H, Fin)
    b1_t = params["b1"].reshape(1, H).T         # (H, 1)
    w2_t = params["w2"].T                       # (Fo, H)
    b2_t = params["b2"].reshape(1, Fo).T        # (Fo, 1)

    grid = (E_pad // te,)

    def row_spec(f):                    # streamed: new lane-block per grid step
        return pl.BlockSpec((f, te), lambda i: (0, i))

    def const_spec(shape):              # VMEM-resident across all grid steps
        return pl.BlockSpec(shape, lambda i: (0, 0))

    out_t = pl.pallas_call(
        edge_mlp_kernel,
        out_shape=jax.ShapeDtypeStruct((Fo, E_pad), src.dtype),
        grid=grid,
        in_specs=[
            row_spec(Fin),              # fused [src; dest; edge] tile
            const_spec(w1_t.shape),
            const_spec(b1_t.shape),
            const_spec(w2_t.shape),
            const_spec(b2_t.shape),
        ],
        out_specs=row_spec(Fo),
        compiler_params=pltpu.CompilerParams(
            dimension_semantics=("parallel",)),
    )(x_t, w1_t, b1_t, w2_t, b2_t)

    # Single transpose back to the PyTorch (E, Fe) layout, drop padded lanes.
    return out_t[:, :E].T


def init_params(key, num_node_features, num_edge_features, dtype=jnp.float32):
    """Deterministic synthetic init matching the nn.Module's shapes."""
    input_size = 2 * num_node_features + num_edge_features
    hidden = input_size // 2
    k1, k2, k3, k4 = jax.random.split(key, 4)
    # Stored as (in, out), i.e. PyTorch Linear weight transposed.
    w1 = jax.random.normal(k1, (input_size, hidden), dtype) * 0.1
    b1 = jax.random.normal(k2, (1, hidden), dtype) * 0.1
    w2 = jax.random.normal(k3, (hidden, num_edge_features), dtype) * 0.1
    b2 = jax.random.normal(k4, (1, num_edge_features), dtype) * 0.1
    return {"w1": w1, "b1": b1, "w2": w2, "b2": b2}


def reference_forward(src, dest, edge_attr, params):
    """Pure-JAX reference of the PyTorch forward (for verification)."""
    x = jnp.concatenate([src, dest, edge_attr], axis=1)
    h = jnp.maximum(x @ params["w1"] + params["b1"], 0.0)
    return h @ params["w2"] + params["b2"]


if __name__ == "__main__":
    num_node_features = 4
    num_edge_features = 8
    num_edges = 300          # not a multiple of 128 -> exercises lane padding

    key = jax.random.PRNGKey(0)
    kp, ks, kd, ke = jax.random.split(key, 4)

    params = init_params(kp, num_node_features, num_edge_features)
    src = jax.random.normal(ks, (num_edges, num_node_features), jnp.float32)
    dest = jax.random.normal(kd, (num_edges, num_node_features), jnp.float32)
    edge_attr = jax.random.normal(ke, (num_edges, num_edge_features), jnp.float32)

    # Small tile so the demo runs multiple pipelined grid steps (3 x 128 lanes).
    out = edge_model_forward(src, dest, edge_attr, params, tile_e=128)
    out = jax.block_until_ready(out)

    ref = reference_forward(src, dest, edge_attr, params)
    assert out.shape == (num_edges, num_edge_features)
    assert jnp.allclose(out, ref, atol=1e-5, rtol=1e-5), "mismatch vs reference"

    print("KERNEL_OK")
</pallas_src>

<mosaic_0001>
module attributes {stable_mosaic.version = 11 : i64} {
  func.func @edge_mlp_kernel(%arg0: i32, %arg1: memref<16x128xf32, #tpu.memory_space<vmem>>, %arg2: memref<8x16xf32, #tpu.memory_space<vmem>>, %arg3: memref<8x1xf32, #tpu.memory_space<vmem>>, %arg4: memref<8x8xf32, #tpu.memory_space<vmem>>, %arg5: memref<8x1xf32, #tpu.memory_space<vmem>>, %arg6: memref<8x128xf32, #tpu.memory_space<vmem>>) attributes {dimension_semantics = [#tpu.dimension_semantics<parallel>], iteration_bounds = array<i64: 3>, scalar_prefetch = 0 : i64, scratch_operands = 0 : i64, tpu.core_type = #tpu.core_type<tc>, window_params = [{transform_indices = @transform_0, window_bounds = array<i64: 16, 128>}, {pipeline_mode = #tpu.pipeline_mode<synchronous>, transform_indices = @transform_1, window_bounds = array<i64: 8, 16>}, {pipeline_mode = #tpu.pipeline_mode<synchronous>, transform_indices = @transform_2, window_bounds = array<i64: 8, 1>}, {pipeline_mode = #tpu.pipeline_mode<synchronous>, transform_indices = @transform_3, window_bounds = array<i64: 8, 8>}, {pipeline_mode = #tpu.pipeline_mode<synchronous>, transform_indices = @transform_4, window_bounds = array<i64: 8, 1>}, {transform_indices = @transform_5, window_bounds = array<i64: 8, 128>}]} {
    %c0 = arith.constant 0 : index
    %c0_0 = arith.constant 0 : index
    %0 = vector.load %arg2[%c0, %c0_0] : memref<8x16xf32, #tpu.memory_space<vmem>>, vector<8x16xf32>
    %c0_1 = arith.constant 0 : index
    %c0_2 = arith.constant 0 : index
    %1 = vector.load %arg1[%c0_1, %c0_2] : memref<16x128xf32, #tpu.memory_space<vmem>>, vector<16x128xf32>
    %cst = arith.constant dense<0.000000e+00> : vector<8x128xf32>
    %2 = tpu.matmul %0, %1, %cst {dimension_numbers = #tpu.dot_dimension_numbers<[1], [0], [0], [1], [0, 0, 1, 1], [], []>} : vector<8x16xf32>, vector<16x128xf32>, vector<8x128xf32> -> vector<8x128xf32>
    %c0_3 = arith.constant 0 : index
    %c0_4 = arith.constant 0 : index
    %3 = vector.load %arg3[%c0_3, %c0_4] : memref<8x1xf32, #tpu.memory_space<vmem>>, vector<8x1xf32>
    %4 = vector.broadcast %3 : vector<8x1xf32> to vector<8x128xf32>
    %5 = arith.addf %2, %4 : vector<8x128xf32>
    %cst_5 = arith.constant 0.000000e+00 : f32
    %6 = vector.broadcast %cst_5 : f32 to vector<8x128xf32>
    %7 = arith.maximumf %5, %6 : vector<8x128xf32>
    %c0_6 = arith.constant 0 : index
    %c0_7 = arith.constant 0 : index
    %8 = vector.load %arg4[%c0_6, %c0_7] : memref<8x8xf32, #tpu.memory_space<vmem>>, vector<8x8xf32>
    %cst_8 = arith.constant dense<0.000000e+00> : vector<8x128xf32>
    %9 = tpu.matmul %8, %7, %cst_8 {dimension_numbers = #tpu.dot_dimension_numbers<[1], [0], [0], [1], [0, 0, 1, 1], [], []>} : vector<8x8xf32>, vector<8x128xf32>, vector<8x128xf32> -> vector<8x128xf32>
    %c0_9 = arith.constant 0 : index
    %c0_10 = arith.constant 0 : index
    %10 = vector.load %arg5[%c0_9, %c0_10] : memref<8x1xf32, #tpu.memory_space<vmem>>, vector<8x1xf32>
    %11 = vector.broadcast %10 : vector<8x1xf32> to vector<8x128xf32>
    %12 = arith.addf %9, %11 : vector<8x128xf32>
    %c0_11 = arith.constant 0 : index
    %c0_12 = arith.constant 0 : index
    %13 = vector.load %arg6[%c0_11, %c0_12] : memref<8x128xf32, #tpu.memory_space<vmem>>, vector<8x128xf32>
    tpu.vector_store %arg6[%c0_11, %c0_12], %12 {strides = array<i32>} : memref<8x128xf32, #tpu.memory_space<vmem>>, vector<8x128xf32>,
    return
  }
  func.func @transform_0(%arg0: i32) -> (i32, i32) {
    %c0_i32 = arith.constant 0 : i32
    %c0_i32_0 = arith.constant 0 : i32
    return %c0_i32, %arg0 : i32, i32
  }
  func.func @transform_1(%arg0: i32) -> (i32, i32) {
    %c0_i32 = arith.constant 0 : i32
    %c0_i32_0 = arith.constant 0 : i32
    %c0_i32_1 = arith.constant 0 : i32
    return %c0_i32, %c0_i32_0 : i32, i32
  }
  func.func @transform_2(%arg0: i32) -> (i32, i32) {
    %c0_i32 = arith.constant 0 : i32
    %c0_i32_0 = arith.constant 0 : i32
    %c0_i32_1 = arith.constant 0 : i32
    return %c0_i32, %c0_i32_0 : i32, i32
  }
  func.func @transform_3(%arg0: i32) -> (i32, i32) {
    %c0_i32 = arith.constant 0 : i32
    %c0_i32_0 = arith.constant 0 : i32
    %c0_i32_1 = arith.constant 0 : i32
    return %c0_i32, %c0_i32_0 : i32, i32
  }
  func.func @transform_4(%arg0: i32) -> (i32, i32) {
    %c0_i32 = arith.constant 0 : i32
    %c0_i32_0 = arith.constant 0 : i32
    %c0_i32_1 = arith.constant 0 : i32
    return %c0_i32, %c0_i32_0 : i32, i32
  }
  func.func @transform_5(%arg0: i32) -> (i32, i32) {
    %c0_i32 = arith.constant 0 : i32
    %c0_i32_0 = arith.constant 0 : i32
    return %c0_i32, %arg0 : i32, i32
  }
}

</mosaic_0001>

<bundles_post_ra>
// kernel: tpu_custom_call.1
= control target key start
LH: loop header
LB: loop body
LE: loop exit
PB: predicated region body
PF: predicated region fallthrough
CT: control target
= control target key end

     0   :  { %10 = vsyncpa [#allocation3], 0  ;;  %s890_s0 = inlined_call_operand.hbm [shape: f32[16,384], index: 0, kind: input, shape index: {}]   ;;  %s891_s1 = inlined_call_operand.vmem [shape: f32[8,16], index: 1, kind: input, shape index: {}]   ;;  %s892_s2 = inlined_call_operand.vmem [shape: f32[8,1], index: 2, kind: input, shape index: {}]   ;;  %s893_s3 = inlined_call_operand.vmem [shape: f32[8,8], index: 3, kind: input, shape index: {}]   ;;  %s894_s4 = inlined_call_operand.vmem [shape: f32[8,1], index: 4, kind: input, shape index: {}]   ;;  %s895_s5 = inlined_call_operand.hbm [shape: f32[8,384], index: 5, kind: output, shape index: {}]  }
   0x1   :  { %12 = vsyncpa [#allocation3 + $0x1], 0 }
   0x2   :  { %13 = vsyncpa [#allocation4], 0 }
   0x3   :  { %15 = vsyncpa [#allocation4 + $0x1], 0  ;;  %s717_s18 = smov 0   ;;  %s719_s19 = smov 0  }
   0x4   :  { %s721_s20 = smov 0   ;;  %s723_s21 = smov 0  }
   0x5 LB: > { %s738_s22 = sadd.s32 4294967295, %s676_s21   ;;  %s492_s23 = sadd.s32 4294967294, %s676_s21   ;;  %s676_s21 = sphi %s723_s21, %s908_s21   ;;  %s672_s20 = sphi %s721_s20, %s907_s20   ;;  %s668_s19 = sphi %s719_s19, %s906_s19   ;;  %s664_s18 = sphi %s717_s18, %s905_s18  }
   0x6   : > { %s742_s24 = sadd.s32 1, %s676_s21   ;;  %s28_s25 = sadd.s32 1, %s672_s20 }
   0x7   : > { %s25_s26 = ssub.s32 %s676_s21, %s742_s24  ;;  %p35_p0 = scmp.ne.s32.totalorder %s672_s20, %s668_s19 }
   0x8   : > { %p26_p1 = scmp.eq.s32.totalorder %s25_s26, 0  ;;  %p36_p2 = scmp.eq.s32.totalorder %s676_s21, 0 }
   0x9   : > { %p41_p3 = scmp.ne.s32.totalorder %s668_s19, %s664_s18  ;;  %p42_p4 = scmp.eq.s32.totalorder %s738_s22, 0 }
   0xa   : > { %s754_s27 = scalar_select %p26_p1, %s672_s20, %s28_s25  }
   0xb   : > { %p756_p5 = por %p36_p2, %p35_p0  ;;  %p760_p6 = por %p42_p4, %p41_p3 }
   0xc   : > { %p149_p7 = scmp.eq.s32.totalorder %s738_s22, 2  ;;  %p155_p8 = scmp.eq.s32.totalorder %s492_s23, 2 }
   0xd   : > { %p538_p9 = scmp.lt.s32.totalorder %s676_s21, 3  ;;  %s187_s7 = sand.u32 1, %s672_s20  }
   0xe   : > { %p766_p10 = por %p149_p7, %p35_p0  ;;  %p770_p11 = por %p155_p8, %p41_p3 }
   0xf   : > { %s496_s8 = sshll.u32 %s676_s21, 7  ;;  %s495_s9 = sshll.u32 %s187_s7, 4 }
  0x10   : > { %s899_s30 = scalar_select %p766_p10, 1, 0 }
  0x11   : > { %s900_s6 = scalar_select %p770_p11, 1, 0 }
  0x12   : > { %s779_s12 = scalar_lea.hbm %s890_s0, %s496_s8  ;;  %s191_s13 = scalar_lea.vmem [#allocation2], %s495_s9 }
  0x13   : > { %s197_s14 = sshll.u32 %s191_s13, 4  ;;  %p783_p12 = pnand %p538_p9, %p756_p5  ;;  %s787_s14 = int_to_ptr.vmem [resolvable:$true] %s197_s14 }
  0x14   : > { %s790_s16 = scalar_lea.sflag [#allocation3], %s187_s7  ;;  %s580_s17 = scalar_lea.hbm %s779_s12, 256 }
  0x15   : > { %p581_p0 = scmp.ne.s32.totalorder %s779_s12, %s580_s17  ;;  %p582_p1 = pneg %p783_p12 }
  0x16   : > { %s585_s26 = scalar_lea.hbm %s890_s0, 768  ;;  %p586_p4 = scmp.lt.u32.totalorder %s779_s12, %s890_s0 }
  0x17   : > { %p583_p2 = pnand %p582_p1, %p581_p0  ;;  %p587_p5 = scmp.lt.u32.totalorder %s585_s26, %s580_s17 }
  0x18   : > { %p589_p8 = scmp.lt.u32.totalorder %s580_s17, %s779_s12 }
  0x19   : > { %p584_p3 = pneg %p583_p2  ;;  %p588_p7 = por %p587_p5, %p586_p4 }
  0x1b   : > { %p590_p9 = por %p589_p8, %p588_p7 }
  0x1d   : > { %p591_p13 = pnand %p590_p9, %p584_p3 }
  0x1f   : > { %594 = shalt.err (!%p591_p13)
}
  0x20   : > { %s595_s7 = scalar_lea.vmem %s787_s14, 256  ;;  %s678_s9 = smov [#allocation2]  }
  0x21   : > { %p596_p0 = scmp.ne.s32.totalorder %s787_s14, %s595_s7  ;;  %s600_s10 = sshll.u32 %s678_s9, 4  ;;  %s601_s10 = int_to_ptr.vmem [resolvable:$false] %s600_s10 }
  0x22   : > { %s602_s11 = scalar_lea.vmem %s601_s10, 512  ;;  %p603_p10 = scmp.lt.s32.totalorder %s787_s14, %s601_s10 }
  0x23   : > { %p598_p2 = pnand %p596_p0, %p582_p1  ;;  %p604_p4 = scmp.lt.s32.totalorder %s602_s11, %s595_s7 }
  0x25   : > { %p599_p11 = pneg %p598_p2  ;;  %p605_p5 = por %p604_p4, %p603_p10 }
  0x27   : > { %p606_p7 = pnand %p605_p5, %p599_p11 }
  0x29   : > { %609 = shalt.err (!%p606_p7)
}
  0x2a   : > { %s679_s13 = smov 384   ;;  %s680_s17 = smov 128  }
  0x2b   : > { %s681_s23 = smov 8   ;;  %p205_p13 = scmp.lt.s32.totalorder %s676_s21, 4 }
  0x2c   : > { %533 = dma.hbm_to_vmem [thread:$0]  (!%p783_p12), %s779_s12, 256, %s787_s14, %s790_s16, %s679_s13, %s680_s17, %s681_s23  }
  0x2d   : > { %p902_p1 = scmp.ge.s32.totalorder %s676_s21, 1 }
  0x2f   : > { %p206_p3 = pnand %p902_p1, %p205_p13 }
  0x30   : > { %s822_s25 = sand.u32 (!%p206_p3), 1, %s668_s19  }
  0x31   : > { %209 = sbr.rel (%p206_p3) target bundleno = 509 (0x1fd), region = 40  ;;  %s498_s26 = sshll.u32 (!%p206_p3), %s822_s25, 4 }
  0x32   : > { %s212_s28 = scalar_lea.sflag (!%p206_p3), [#allocation3], %s822_s25  ;;  %s215_s8 = scalar_lea.vmem (!%p206_p3), [#allocation2], %s498_s26 }
  0x38   : > { %655 = dma.done.wait (%p760_p6), %s212_s28, 256  }
  0x39   : > { %657 = vsyncadd (%p760_p6), %s212_s28, 4294967040  ;;  %v682_v0 = vmov 0.0|0.0   ;;  %vm683_vm0 = vmmov 0   ;;  %v684_v1 = vmov 0.0   ;;  %v685_v2 = vmov 0   ;;  %v243_v3 = vld [vmem:[%s215_s8] sm:$0xff] }
  0x3a   : > { %523 = vmatprep.subr.bf16.mxu0 %v682_v0  ;;  %515 = vmatprep.mubr.msk.f32.mxu0 %vm683_vm0, %v684_v1  ;;  %v244_v4 = vld [vmem:[%s215_s8 + $0x8] sm:$0xff]  ;;  %v245_v6 = vld [vmem:[%s892_s2] sm:$0xff]  ;;  %vm251_vm1 = vcmask 130048   ;;  %vm333_vm2 = vcmask 64512   ;;  %s499_s11 = sshll.u32 %s822_s25, 3  ;;  %s503_s13 = sshll.u32 %s738_s22, 7 }
  0x3b   : > { %579 = vset.pattern.permute.xlu0 %v685_v2  ;;  %518 = vmatprep.subr.mxu1 %v684_v1  ;;  %v524_v5 = vpack.c.bf16 %v244_v4, %v243_v3  ;;  %v242_v7 = vld [vmem:[%s891_s1] sm:$0xff]  ;;  %s241_s17 = scalar_lea.vmem [#allocation5], %s499_s11  ;;  %s847_s8 = scalar_lea.hbm %s895_s5, %s503_s13 }
  0x3c   : > { %520 = vmatprep.mubr.msk.f32.mxu1 %vm683_vm0, %v684_v1  ;;  %248 = vperm.xlu0 %579, %v245_v6   ;;  %v327_v8 = vld [vmem:[%s894_s4] sm:$0xff]  ;;  %s422_s23 = sshll.u32 %s241_s17, 4  ;;  %s409_s12 = scalar_lea.sflag [#allocation4], %s822_s25  ;;  %s849_s23 = int_to_ptr.vmem [resolvable:$true] %s422_s23 }
  0x3d   : > { %525 = vmatpush3.bf16.msra.mxu0 %v524_v5  ;;  %v326_v14 = vld [vmem:[%s893_s3] sm:$0xff]  ;;  %s610_s14 = scalar_lea.vmem %s849_s23, 128  ;;  %p903_p10 = scmp.ne.s32.totalorder %s899_s30, 0 }
  0x3e   : > { %p611_p6 = scmp.ne.s32.totalorder %s849_s23, %s610_s14  ;;  %s686_s22 = smov [#allocation5]  }
  0x3f   : > { %s614_s29 = sshll.u32 %s686_s22, 4  ;;  %s615_s29 = int_to_ptr.vmem [resolvable:$false] %s614_s29 }
  0x40   : > { %516 = vmatmul.mubr.msk.f32.vlgmr.msra.gmra.mrb[0].mxu0 %vm251_vm1, %v242_v7  ;;  %330 = vperm.xlu0 %579, %v327_v8   ;;  %p612_p11 = pnand %p611_p6, %p903_p10  ;;  %s616_s15 = scalar_lea.vmem %s615_s29, 256 }
  0x41   : > { %p617_p8 = scmp.lt.s32.totalorder %s849_s23, %s615_s29  ;;  %p618_p9 = scmp.lt.s32.totalorder %s616_s15, %s610_s14 }
  0x42   : > { %p613_p12 = pneg %p612_p11 }
  0x43   : > { %p619_p0 = por %p618_p9, %p617_p8 }
  0x45   : > { %p620_p2 = pnand %p619_p0, %p613_p12 }
  0xbb   : > { %v249_v9 = vpop.permute.xlu0 %248 }
  0xbf   : > { %v331_v15 = vpop.permute.xlu0 %330 }
 0x113   : > { %v321_v10 = vpop.f32.mrb[0].mxu0 }
 0x114   : > { %v322_v11 = vadd.f32 %v321_v10, %v249_v9  ;;  %v517_v12 = vpop.f32.mrb[1].mxu0 }
 0x116   : > { %v325_v13 = vmax.f32 %v322_v11, 0.0 }
 0x118   : > { %519 = vmatpush3.msra.mxu1 %v325_v13 }
 0x119   : > { %521 = vmatmul.mubr.msk.f32.vlgmr.msra.gmra.mrb[0].mxu1 %vm333_vm2, %v326_v14 }
 0x1ec   : > { %v403_v16 = vpop.f32.mrb[0].mxu1 }
 0x1ed   : > { %v404_v17 = vadd.f32 %v403_v16, %v331_v15  ;;  %v522_v18 = vpop.f32.mrb[1].mxu1 }
 0x1ef   : > { %407 = vst [vmem:[%s241_s17] sm:$0xff] %v404_v17 }
 0x1f0   : > { %623 = shalt.err (!%p620_p2)
}
 0x1f1   : > { %s624_s25 = scalar_lea.hbm %s847_s8, 128  ;;  %s628_s9 = scalar_lea.hbm %s895_s5, 384 }
 0x1f2   : > { %p625_p4 = scmp.ne.s32.totalorder %s847_s8, %s624_s25  ;;  %p629_p13 = scmp.lt.u32.totalorder %s847_s8, %s895_s5 }
 0x1f3   : > { %p630_p1 = scmp.lt.u32.totalorder %s628_s9, %s624_s25  ;;  %p632_p6 = scmp.lt.u32.totalorder %s624_s25, %s847_s8 }
 0x1f4   : > { %p626_p5 = pnand %p625_p4, %p903_p10 }
 0x1f5   : > { %p631_p3 = por %p630_p1, %p629_p13 }
 0x1f6   : > { %p627_p7 = pneg %p626_p5 }
 0x1f7   : > { %p633_p11 = por %p632_p6, %p631_p3 }
 0x1f9   : > { %p634_p12 = pnand %p633_p11, %p627_p7 }
 0x1fb   : > { %637 = shalt.err (!%p634_p12)
}
 0x1fc   : > { %528 = dma.vmem_to_hbm [thread:$0]  (%p903_p10), %s849_s23, 128, %s847_s8, %s409_s12  }
 0x1fd PF: > { %p539_p8 = scmp.ge.s32.totalorder %s676_s21, 2  ;;  %s434_s13 = sand.u32 1, %s664_s18  }
 0x1fe   : > { %p904_p9 = scmp.ne.s32.totalorder %s900_s6, 0  ;;  %s435_s17 = scalar_lea.sflag [#allocation4], %s434_s13 }
 0x200   : > { %p535_p0 = pnand %p539_p8, %p904_p9 }
 0x202   : > { %659 = dma.done.wait (!%p535_p0), %s435_s17, 128  }
 0x203   : > { %661 = vsyncadd (!%p535_p0), %s435_s17, 4294967168  ;;  %p18_p2 = scmp.ge.s32.totalorder %s742_s24, 5   ;;  %s905_s18 = smov %s668_s19 }
 0x204   : > { %s906_s19 = smov %s672_s20  ;;  %s907_s20 = smov %s754_s27 }
 0x205   : > { %s908_s21 = smov %s742_s24  ;;  %20 = sbr.rel (!%p18_p2) target bundleno = 5 (0x5), region = 85 }
 0x20c   :  { %440 = vsyncpa [#allocation3], 1 }
 0x20d   :  { %442 = vsyncpa [#allocation3 + $0x1], 1 }
 0x20e   :  { %443 = vsyncpa [#allocation4], 1 }
 0x20f   :  { %445 = vsyncpa [#allocation4 + $0x1], 1 }

</bundles_post_ra>
